<compile_context>
chip_gen: v5e
topology: v5e:2x2
jax: 0.10.0
libtpu: 0.0.40
codegen_flags: <defaults>
</compile_context>

<pallas_src>
import functools

import jax
import jax.numpy as jnp
from jax import lax
from jax.experimental import pallas as pl
from jax.experimental.pallas import tpu as pltpu

_EPS = 1e-5  # PyTorch InstanceNorm3d default (affine=False, biased variance)


def _fused_norm_relu_kernel(cols_ref, w_ref, o_ref, *, group_rows, inv_count):
    """matmul + InstanceNorm3d + ReLU for one (sample, channel-group) block.

    cols_ref: [1, Kdim, N]  per-sample activations (bf16/f32)
    w_ref:    [M,  Kdim]    M = group_rows * channels_in_this_block, rows co-major
    o_ref:    [1, M, N]
    """
    cols = cols_ref[0]                                               # [Kdim, N]
    acc = jnp.dot(w_ref[...], cols,
                  preferred_element_type=jnp.float32)                # MXU -> f32 [M, N]
    m, n = acc.shape

    if group_rows == 1:
        # one row per output channel (general / im2col path)
        s1 = acc.sum(axis=1, keepdims=True)                          # [M, 1]
        s2 = (acc * acc).sum(axis=1, keepdims=True)                  # single fused sweep
        mean = s1 * inv_count
        var = s2 * inv_count - mean * mean                           # E[x^2] - mean^2 (f32)
        y = jnp.maximum((acc - mean) * lax.rsqrt(var + _EPS), 0.0)
        o_ref[0] = y.astype(o_ref.dtype)
    else:
        # group_rows (= k^3) consecutive rows belong to the same output channel
        cg = m // group_rows
        acc3 = acc.reshape(cg, group_rows, n)                        # free view (vreg-aligned)
        s1 = acc3.sum(axis=2, keepdims=True).sum(axis=1, keepdims=True)            # [cg,1,1]
        s2 = (acc3 * acc3).sum(axis=2, keepdims=True).sum(axis=1, keepdims=True)
        mean = s1 * inv_count
        var = s2 * inv_count - mean * mean
        y = jnp.maximum((acc3 - mean) * lax.rsqrt(var + _EPS), 0.0)
        o_ref[0] = y.reshape(m, n).astype(o_ref.dtype)


def _round_up(x, m):
    return (x + m - 1) // m * m


def _pad_lanes(a, n_to):
    n = a.shape[-1]
    if n == n_to:
        return a
    return jnp.pad(a, [(0, 0)] * (a.ndim - 1) + [(0, n_to - n)])


def _pick_channel_groups(c_out, rows_per_channel, n_lanes, acc_budget_bytes=8 << 20):
    """Number of output-channel groups for the second grid axis.

    Keeps each block's row count a multiple of 8 (sublane friendly), prefers >=2
    groups (so each v7x TensorCore gets >=2 grid steps even when B == 2), and grows
    the group count until the per-step f32 accumulator fits the VMEM budget.
    """
    def ok(g):
        if c_out % g:
            return False
        rows = rows_per_channel * (c_out // g)
        return rows % 8 == 0 or g == 1

    g = 2 if ok(2) else 1
    while rows_per_channel * (c_out // g) * n_lanes * 4 > acc_budget_bytes:
        nxt = next((c for c in range(g + 1, c_out + 1) if ok(c)), None)
        if nxt is None:
            break
        g = nxt
    return g


def deconv_forward(x, weight, bias=None, *, stride, kernel_size,
                   compute_dtype=jnp.bfloat16):
    """ConvTranspose3d(k, s, padding=0) -> InstanceNorm3d(affine=False) -> ReLU.

    x:      [B, Cin, D, H, W]       (NCDHW, as in PyTorch)
    weight: [Cin, Cout, k, k, k]    (PyTorch ConvTranspose3d layout)
    bias:   [Cout] or None.  NOTE: the per-channel bias is mathematically cancelled
            by InstanceNorm3d's mean subtraction, so it is (correctly) never used.
    returns [B, Cout, Do, Ho, Wo] with Do = (D-1)*s + k, etc.
    """
    del bias  # exactly cancelled by InstanceNorm3d(affine=False) mean subtraction
    B, Cin, D, H, W = x.shape
    _, Cout, _, _, _ = weight.shape
    k, s = int(kernel_size), int(stride)
    Do, Ho, Wo = (D - 1) * s + k, (H - 1) * s + k, (W - 1) * s + k
    n_true_out = Do * Ho * Wo

    if s == k:
        # --- fast path: non-overlapping taps => one matmul + depth-to-space --------
        n_in = D * H * W
        n_pad = _round_up(n_in, 128)
        cols = _pad_lanes(x.reshape(B, Cin, n_in), n_pad).astype(compute_dtype)
        # W_mat[co*k^3 + a*k^2 + b*k + c, ci] = weight[ci, co, a, b, c]
        w_mat = jnp.transpose(weight, (1, 2, 3, 4, 0)).reshape(Cout * k ** 3, Cin)
        w_mat = w_mat.astype(compute_dtype)
        rows_per_channel = k ** 3
    else:
        # --- general fallback (overlapping taps): dilate by s, pad by k-1, im2col --
        # TODO(synk): for large shapes, move tap extraction in-kernel (manual DMA of
        #             the padded sample + k^3 small matmuls) to avoid materializing
        #             the k^3-inflated cols array in HBM.
        xd = x.astype(compute_dtype)
        pad_cfg = [(0, 0, 0), (0, 0, 0),
                   (k - 1, k - 1, s - 1), (k - 1, k - 1, s - 1), (k - 1, k - 1, s - 1)]
        xp = lax.pad(xd, jnp.zeros((), xd.dtype), pad_cfg)
        taps = [xp[:, :, a:a + Do, b:b + Ho, c:c + Wo]
                for a in range(k) for b in range(k) for c in range(k)]
        cols = jnp.stack(taps, axis=1).reshape(B, Cin * k ** 3, n_true_out)
        n_pad = _round_up(n_true_out, 128)
        cols = _pad_lanes(cols, n_pad)
        # matching flattened (flipped) weight: [Cout, k^3*Cin]
        wf = jnp.transpose(weight[:, :, ::-1, ::-1, ::-1], (2, 3, 4, 0, 1))
        w_mat = wf.reshape(k ** 3 * Cin, Cout).T.astype(compute_dtype)
        rows_per_channel = 1

    m_total, k_dim = w_mat.shape
    n_groups = _pick_channel_groups(Cout, rows_per_channel, n_pad)
    m_pg = m_total // n_groups
    inv_count = 1.0 / float(n_true_out)   # true voxel count; padded lanes contribute 0

    kernel = functools.partial(_fused_norm_relu_kernel,
                               group_rows=rows_per_channel, inv_count=inv_count)

    out = pl.pallas_call(
        kernel,
        out_shape=jax.ShapeDtypeStruct((B, m_total, n_pad), x.dtype),
        grid_spec=pltpu.PrefetchScalarGridSpec(
            num_scalar_prefetch=0,
            grid=(B, n_groups),
            in_specs=[
                # per-sample activations; block index independent of g -> re-used
                # (not re-DMA'd) across consecutive channel-group steps.
                pl.BlockSpec((1, k_dim, n_pad), lambda b, g: (b, 0, 0)),
                pl.BlockSpec((m_pg, k_dim), lambda b, g: (g, 0)),      # weight slab
            ],
            out_specs=pl.BlockSpec((1, m_pg, n_pad), lambda b, g: (b, g, 0)),
        ),
        compiler_params=pltpu.CompilerParams(
            dimension_semantics=("parallel", "parallel"),
            vmem_limit_bytes=32 << 20,
        ),
    )(cols, w_mat)

    if s == k:
        n_in = D * H * W
        out = out[:, :, :n_in]                                   # drop lane padding
        out = out.reshape(B, Cout, k, k, k, D, H, W)
        out = jnp.transpose(out, (0, 1, 5, 2, 6, 3, 7, 4))       # depth-to-space
        return out.reshape(B, Cout, Do, Ho, Wo)
    out = out[:, :, :n_true_out]
    return out.reshape(B, Cout, Do, Ho, Wo)


def _reference(x, weight, bias, stride, kernel_size):
    """Pure-JAX reference: ConvTranspose3d + InstanceNorm3d + ReLU."""
    k, s = int(kernel_size), int(stride)
    Cout = weight.shape[1]
    wf = weight[:, :, ::-1, ::-1, ::-1]                # flip spatial
    w_oidhw = jnp.transpose(wf, (1, 0, 2, 3, 4))       # [Cout, Cin, k, k, k]
    y = lax.conv_general_dilated(
        x, w_oidhw, window_strides=(1, 1, 1),
        padding=[(k - 1, k - 1)] * 3,
        lhs_dilation=(s, s, s),
        dimension_numbers=("NCDHW", "OIDHW", "NCDHW"),
        precision=lax.Precision.HIGHEST)
    y = y + bias.reshape(1, Cout, 1, 1, 1)
    mean = y.mean(axis=(2, 3, 4), keepdims=True)
    var = jnp.mean((y - mean) ** 2, axis=(2, 3, 4), keepdims=True)
    y = (y - mean) / jnp.sqrt(var + _EPS)
    return jnp.maximum(y, 0.0)


if __name__ == "__main__":
    key = jax.random.PRNGKey(0)
    k_x, k_w, k_b, k_x2, k_w2, k_b2 = jax.random.split(key, 6)

    # Case 1: typical UNet upsampling deconv (stride == kernel_size -> fast path).
    B, Cin, Cout = 2, 4, 8
    D, H, W = 4, 8, 8
    ksz, st = 2, 2
    x = jax.random.normal(k_x, (B, Cin, D, H, W), dtype=jnp.float32)
    w = 0.1 * jax.random.normal(k_w, (Cin, Cout, ksz, ksz, ksz), dtype=jnp.float32)
    b = 0.1 * jax.random.normal(k_b, (Cout,), dtype=jnp.float32)

    out = jax.block_until_ready(deconv_forward(x, w, b, stride=st, kernel_size=ksz))
    Do, Ho, Wo = (D - 1) * st + ksz, (H - 1) * st + ksz, (W - 1) * st + ksz
    assert out.shape == (B, Cout, Do, Ho, Wo), out.shape
    assert out.dtype == x.dtype
    ref = _reference(x, w, b, st, ksz)
    err = float(jnp.max(jnp.abs(out - ref)))
    assert bool(jnp.allclose(out, ref, atol=3e-2, rtol=3e-2)), err

    # Case 2: overlapping taps (stride < kernel_size -> general fallback path).
    D2, H2, W2 = 3, 4, 4
    ksz2, st2 = 2, 1
    x2 = jax.random.normal(k_x2, (B, Cin, D2, H2, W2), dtype=jnp.float32)
    w2 = 0.1 * jax.random.normal(k_w2, (Cin, Cout, ksz2, ksz2, ksz2), dtype=jnp.float32)
    b2 = 0.1 * jax.random.normal(k_b2, (Cout,), dtype=jnp.float32)
    out2 = jax.block_until_ready(deconv_forward(x2, w2, b2, stride=st2, kernel_size=ksz2))
    ref2 = _reference(x2, w2, b2, st2, ksz2)
    assert out2.shape == ref2.shape, (out2.shape, ref2.shape)
    err2 = float(jnp.max(jnp.abs(out2 - ref2)))
    assert bool(jnp.allclose(out2, ref2, atol=3e-2, rtol=3e-2)), err2

    print("KERNEL_OK")
</pallas_src>

<mosaic_0001>
module attributes {stable_mosaic.version = 11 : i64} {
  func.func @_fused_norm_relu_kernel(%arg0: i32, %arg1: i32, %arg2: memref<1x4x256xbf16, #tpu.memory_space<vmem>>, %arg3: memref<32x4xbf16, #tpu.memory_space<vmem>>, %arg4: memref<1x32x256xf32, #tpu.memory_space<vmem>>) attributes {dimension_semantics = [#tpu.dimension_semantics<parallel>, #tpu.dimension_semantics<parallel>], iteration_bounds = array<i64: 2, 2>, scalar_prefetch = 0 : i64, scratch_operands = 0 : i64, tpu.core_type = #tpu.core_type<tc>, window_params = [{transform_indices = @transform_0, window_bounds = array<i64: 1, 4, 256>}, {transform_indices = @transform_1, window_bounds = array<i64: 32, 4>}, {transform_indices = @transform_2, window_bounds = array<i64: 1, 32, 256>}]} {
    %c0 = arith.constant 0 : index
    %c0_0 = arith.constant 0 : index
    %c0_1 = arith.constant 0 : index
    %0 = vector.load %arg2[%c0, %c0_0, %c0_1] : memref<1x4x256xbf16, #tpu.memory_space<vmem>>, vector<1x4x256xbf16>
    %1 = vector.shape_cast %0 : vector<1x4x256xbf16> to vector<4x256xbf16>
    %c0_2 = arith.constant 0 : index
    %c0_3 = arith.constant 0 : index
    %2 = vector.load %arg3[%c0_2, %c0_3] : memref<32x4xbf16, #tpu.memory_space<vmem>>, vector<32x4xbf16>
    %cst = arith.constant dense<0.000000e+00> : vector<32x256xf32>
    %3 = tpu.matmul %2, %1, %cst {dimension_numbers = #tpu.dot_dimension_numbers<[1], [0], [0], [1], [0, 0, 1, 1], [], []>} : vector<32x4xbf16>, vector<4x256xbf16>, vector<32x256xf32> -> vector<32x256xf32>
    %4 = vector.shape_cast %3 : vector<32x256xf32> to vector<4x8x256xf32>
    %cst_4 = arith.constant dense<0.000000e+00> : vector<4x8xf32>
    %5 = vector.multi_reduction <add>, %4, %cst_4 [2] : vector<4x8x256xf32> to vector<4x8xf32>
    %6 = vector.shape_cast %5 : vector<4x8xf32> to vector<4x8x1xf32>
    %cst_5 = arith.constant dense<0.000000e+00> : vector<4x1xf32>
    %7 = vector.multi_reduction <add>, %6, %cst_5 [1] : vector<4x8x1xf32> to vector<4x1xf32>
    %8 = vector.shape_cast %7 : vector<4x1xf32> to vector<4x1x1xf32>
    %9 = arith.mulf %4, %4 : vector<4x8x256xf32>
    %cst_6 = arith.constant dense<0.000000e+00> : vector<4x8xf32>
    %10 = vector.multi_reduction <add>, %9, %cst_6 [2] : vector<4x8x256xf32> to vector<4x8xf32>
    %11 = vector.shape_cast %10 : vector<4x8xf32> to vector<4x8x1xf32>
    %cst_7 = arith.constant dense<0.000000e+00> : vector<4x1xf32>
    %12 = vector.multi_reduction <add>, %11, %cst_7 [1] : vector<4x8x1xf32> to vector<4x1xf32>
    %13 = vector.shape_cast %12 : vector<4x1xf32> to vector<4x1x1xf32>
    %cst_8 = arith.constant 4.8828125E-4 : f32
    %14 = vector.broadcast %cst_8 : f32 to vector<4x1x1xf32>
    %15 = arith.mulf %8, %14 : vector<4x1x1xf32>
    %cst_9 = arith.constant 4.8828125E-4 : f32
    %16 = vector.broadcast %cst_9 : f32 to vector<4x1x1xf32>
    %17 = arith.mulf %13, %16 : vector<4x1x1xf32>
    %18 = arith.mulf %15, %15 : vector<4x1x1xf32>
    %19 = arith.subf %17, %18 : vector<4x1x1xf32>
    %20 = vector.broadcast %15 : vector<4x1x1xf32> to vector<4x8x256xf32>
    %21 = arith.subf %4, %20 : vector<4x8x256xf32>
    %cst_10 = arith.constant 9.99999974E-6 : f32
    %22 = vector.broadcast %cst_10 : f32 to vector<4x1x1xf32>
    %23 = arith.addf %19, %22 : vector<4x1x1xf32>
    %24 = math.rsqrt %23 : vector<4x1x1xf32>
    %25 = vector.broadcast %24 : vector<4x1x1xf32> to vector<4x8x256xf32>
    %26 = arith.mulf %21, %25 : vector<4x8x256xf32>
    %cst_11 = arith.constant 0.000000e+00 : f32
    %27 = vector.broadcast %cst_11 : f32 to vector<4x8x256xf32>
    %28 = arith.maximumf %26, %27 : vector<4x8x256xf32>
    %29 = vector.shape_cast %28 : vector<4x8x256xf32> to vector<32x256xf32>
    %c0_12 = arith.constant 0 : index
    %c0_13 = arith.constant 0 : index
    %c0_14 = arith.constant 0 : index
    %30 = vector.load %arg4[%c0_12, %c0_13, %c0_14] : memref<1x32x256xf32, #tpu.memory_space<vmem>>, vector<1x32x256xf32>
    %31 = vector.shape_cast %30 : vector<1x32x256xf32> to vector<32x256xf32>
    %32 = vector.shape_cast %29 : vector<32x256xf32> to vector<1x32x256xf32>
    tpu.vector_store %arg4[%c0_12, %c0_13, %c0_14], %32 {strides = array<i32>} : memref<1x32x256xf32, #tpu.memory_space<vmem>>, vector<1x32x256xf32>,
    return
  }
  func.func @transform_0(%arg0: i32, %arg1: i32) -> (i32, i32, i32) {
    %c0_i32 = arith.constant 0 : i32
    %c0_i32_0 = arith.constant 0 : i32
    %c0_i32_1 = arith.constant 0 : i32
    return %arg0, %c0_i32, %c0_i32_0 : i32, i32, i32
  }
  func.func @transform_1(%arg0: i32, %arg1: i32) -> (i32, i32) {
    %c0_i32 = arith.constant 0 : i32
    %c0_i32_0 = arith.constant 0 : i32
    return %arg1, %c0_i32 : i32, i32
  }
  func.func @transform_2(%arg0: i32, %arg1: i32) -> (i32, i32, i32) {
    %c0_i32 = arith.constant 0 : i32
    %c0_i32_0 = arith.constant 0 : i32
    return %arg0, %arg1, %c0_i32 : i32, i32, i32
  }
}

</mosaic_0001>

<bundles_post_ra>
// kernel: tpu_custom_call.1
= control target key start
LH: loop header
LB: loop body
LE: loop exit
PB: predicated region body
PF: predicated region fallthrough
CT: control target
= control target key end

     0   :  { %7 = vsyncpa [#allocation3], 0  ;;  %s968_s0 = inlined_call_operand.vmem [shape: bf16[2,4,256], index: 0, kind: input, shape index: {}]   ;;  %s969_s1 = inlined_call_operand.vmem [shape: bf16[64,4], index: 1, kind: input, shape index: {}]   ;;  %s970_s2 = inlined_call_operand.hbm [shape: f32[2,64,256], index: 2, kind: output, shape index: {}]  }
   0x1   :  { %9 = vsyncpa [#allocation3 + $0x1], 0  ;;  %s757_s9 = smov 0   ;;  %s759_s10 = smov 0  }
   0x2   :  { %s761_s11 = smov 0   ;;  %s763_s12 = smov 0  }
   0x3   :  { %s765_s13 = smov 0   ;;  %s767_s14 = smov 0  }
   0x4   :  { %s769_s15 = smov 0   ;;  %s771_s16 = smov 0  }
   0x5 LB: > { %s528_s17 = sadd.s32 4294967295, %s738_s16   ;;  %s529_s18 = sadd.s32 4294967294, %s738_s16   ;;  %s738_s16 = sphi %s771_s16, %s15_s16   ;;  %s734_s15 = sphi %s769_s15, %s979_s15   ;;  %s730_s14 = sphi %s767_s14, %s978_s14   ;;  %s726_s13 = sphi %s765_s13, %s977_s13   ;;  %s722_s12 = sphi %s763_s12, %s976_s12   ;;  %s718_s11 = sphi %s761_s11, %s975_s11   ;;  %s714_s10 = sphi %s759_s10, %s974_s10   ;;  %s710_s9 = sphi %s757_s9, %s973_s9  }
   0x6   : > { %s24_s19 = sadd.s32 1, %s730_s14  ;;  %s27_s20 = sadd.s32 1, %s734_s15 }
   0x7   : > { %p25_p0 = scmp.ge.s32.totalorder %s24_s19, 2  ;;  %p98_p1 = scmp.ne.s32.totalorder %s718_s11, %s714_s10 }
   0x8   : > { %p99_p2 = scmp.eq.s32.totalorder %s528_s17, 3  ;;  %p104_p5 = scmp.ne.s32.totalorder %s714_s10, %s710_s9 }
   0x9   : > { %s981_s19 = smov (%p25_p0, %s24_s19), 0  ;;  %s983_s20 = smov (!%p25_p0, %s27_s20), %s734_s15 }
   0xa   : > { %s84_s21 = ssub.s32 %s730_s14, %s981_s19  ;;  %p808_p3 = por %p99_p2, %p98_p1 }
   0xb   : > { %p29_p4 = scmp.ge.s32.totalorder %s983_s20, 2  ;;  %p105_p6 = scmp.eq.s32.totalorder %s529_s18, 3 }
   0xc   : > { %p532_p7 = scmp.ge.s32.totalorder %s738_s16, 1  ;;  %p140_p9 = scmp.lt.s32.totalorder %s738_s16, 5 }
   0xd   : > { %s985_s20 = smov (%p29_p4, %s983_s20), 0  ;;  %p817_p8 = por %p105_p6, %p104_p5 }
   0xe   : > { %s83_s24 = ssub.s32 %s734_s15, %s985_s20  ;;  %s88_s25 = sadd.s32 1, %s718_s11 }
   0xf   : > { %s85_s26 = sor.u32 %s84_s21, %s83_s24  ;;  %p141_p10 = pnand %p532_p7, %p140_p9 }
  0x10   : > { %p86_p11 = scmp.eq.s32.totalorder %s85_s26, 0  ;;  %p167_p12 = scmp.lt.s32.totalorder (!%p141_p10), %s726_s13, 1 }
  0x11   : > { %144 = sbr.rel (%p141_p10) target bundleno = 351 (0x15f), region = 28  ;;  %s536_s28 = sshll.u32 (!%p141_p10), %s722_s12, 2 }
  0x12   : > { %s826_s27 = scalar_select %p86_p11, %s718_s11, %s88_s25  }
  0x13   : > { %p173_p13 = scmp.lt.s32.totalorder (!%p141_p10), %s536_s28, 7  ;;  %s164_s18 = sand.u32 (!%p141_p10), 1, %s714_s10  }
  0x14   : > { %s533_s21 = sshll.u32 (!%p141_p10), %s164_s18, 6  ;;  %s560_s25 = sshll.u32 (!%p141_p10), %s722_s12, 3 }
  0x15   : > { %s900_s24 = scalar_lea.vmem (!%p141_p10), [#allocation2], %s533_s21  ;;  %s553_s26 = sshll.u32 (!%p141_p10), %s726_s13, 4 }
  0x16   : > { %s168_s29 = scalar_select %p167_p12, %s726_s13, 1  ;;  %vm206_vm0 = vcmask 1041408   ;;  %vm199_vm1 = vcmask 31744  }
  0x17   : > { %s987_s28 = smov (!%p173_p13, %s536_s28), 7  ;;  %s437_s3 = sshll.u32 %s900_s24, 4  ;;  %s438_s3 = int_to_ptr.vmem [resolvable:$true] %s437_s3 }
  0x18   : > { %s557_s30 = sshll.u32 %s168_s29, 2  ;;  %s537_s6 = sshll.u32 %s987_s28, 2 }
  0x19   : > { %s171_s5 = scalar_lea.vmem %s968_s0, %s557_s30  ;;  %s176_s17 = scalar_lea.vmem %s969_s1, %s537_s6 }
  0x1a   : > { %v180_v0 = vld [vmem:[%s171_s5] sm:$0xf]  ;;  %v559_v6 = vld [vmem:[%s176_s17 + $0x8] sm:$0xff]  ;;  %s434_s28 = sadd.s32 %s560_s25, %s553_s26  ;;  %s422_s5 = scalar_lea.sflag [#allocation3], %s164_s18 }
  0x1b   : > { %196 = vst [vmem:[#allocation1] ss:$4 sm:$0xff] %v180_v0  ;;  %v558_v5 = vld [vmem:[%s176_s17] sm:$0xff]  ;;  %s554_s12 = sshll.u32 %s434_s28, 3  ;;  %s664_s21 = scalar_lea.hbm %s970_s2, 256 }
  0x1c   : > { %s436_s30 = scalar_lea.hbm %s970_s2, %s554_s12 }
  0x1d   : > { %s439_s4 = sshll.u32 %s436_s30, 4  ;;  %s440_s4 = int_to_ptr.hbm [resolvable:$true] %s439_s4 }
  0x1e   : > { %s658_s6 = sshra.s32 %s440_s4, 4  ;;  %s659_s6 = int_to_ptr.hbm [resolvable:$true] %s658_s6 }
  0x1f   : > { %s660_s7 = scalar_lea.hbm %s659_s6, 64  ;;  %p665_p4 = scmp.lt.s32.totalorder %s659_s6, %s970_s2 }
  0x20   : > { %p661_p0 = scmp.ne.s32.totalorder %s659_s6, %s660_s7  ;;  %p666_p5 = scmp.lt.s32.totalorder %s664_s21, %s660_s7 }
  0x22   : > { %v197_v1 = vld.sshfl [vmem:[#allocation1] sm:$0xff pattern:$0x73625140]  ;;  %v198_v2 = vld.sshfl [vmem:[#allocation1 + $0x8] sm:$0xff pattern:$0x73625140]  ;;  %p662_p1 = pnand %p661_p0, %p808_p3  ;;  %p667_p6 = por %p666_p5, %p665_p4 }
  0x23   : > { %v207_v3 = vsel %vm206_vm0, %v197_v1, 0  ;;  %v209_v4 = vsel %vm206_vm0, %v198_v2, 0 }
  0x24   : > { %218 = vmatpush.bf16.msra.mxu0 %v207_v3  ;;  %561 = vmatpush.bf16.msra.mxu2 %v207_v3  ;;  %p663_p2 = pneg %p662_p1 }
  0x25   : > { %237 = vmatpush.bf16.msra.mxu1 %v209_v4  ;;  %562 = vmatpush.bf16.msra.mxu3 %v209_v4 }
  0x26   : > { %p668_p7 = pnand %p667_p6, %p663_p2 }
  0x27   : > { %546 = vmatmul.msk.bf16.vlgmr.msra.gmra.mxu0 %vm199_vm1, %v558_v5  ;;  %547 = vmatmul.msk.bf16.vlgmr.msra.gmra.mxu2 %vm199_vm1, %v559_v6 }
  0x28   : > { %548 = vmatmul.msk.bf16.vlgmr.msra.gmra.mxu1 %vm199_vm1, %v558_v5  ;;  %549 = vmatmul.msk.bf16.vlgmr.msra.gmra.mxu3 %vm199_vm1, %v559_v6 }
  0xa4   : > { %v837_v7 = vpop.f32.mrf.mxu0 }
  0xa5   : > { %v839_v8 = vpop.f32.mrf.mxu1  ;;  %v285_v9 = vmul.f32 %v837_v7, %v837_v7 }
  0xa6   : > { %v249_v10 = vadd.f32 %v839_v8, %v837_v7  ;;  %v286_v11 = vmul.f32 %v839_v8, %v839_v8 }
  0xa8   : > { %250 = vadd.xlane.f32.xlu0 %v249_v10  ;;  %v293_v12 = vadd.f32 %v286_v11, %v285_v9 }
  0xaa   : > { %294 = vadd.xlane.f32.xlu2 %v293_v12  ;;  %v847_v13 = vpop.f32.mrf.mxu2 }
  0xab   : > { %v849_v14 = vpop.f32.mrf.mxu3  ;;  %v289_v23 = vmul.f32 %v847_v13, %v847_v13 }
  0xac   : > { %v851_v15 = vpop.f32.mrf.mxu0  ;;  %v255_v16 = vadd.f32 %v849_v14, %v847_v13  ;;  %v290_v24 = vmul.f32 %v849_v14, %v849_v14 }
  0xad   : > { %v287_v17 = vmul.f32 %v851_v15, %v851_v15  ;;  %v857_v18 = vpop.f32.mrf.mxu1 }
  0xae   : > { %v288_v19 = vmul.f32 %v857_v18, %v857_v18  ;;  %256 = vadd.xlane.f32.xlu1 %v255_v16  ;;  %v252_v20 = vadd.f32 %v857_v18, %v851_v15  ;;  %v299_v27 = vadd.f32 %v290_v24, %v289_v23 }
  0xb0   : > { %253 = vadd.xlane.f32.xlu0 %v252_v20  ;;  %v296_v21 = vadd.f32 %v288_v19, %v287_v17 }
  0xb2   : > { %297 = vadd.xlane.f32.xlu2 %v296_v21  ;;  %v863_v22 = vpop.f32.mrf.mxu2 }
  0xb3   : > { %v869_v25 = vpop.f32.mrf.mxu3  ;;  %v291_v28 = vmul.f32 %v863_v22, %v863_v22 }
  0xb4   : > { %v258_v26 = vadd.f32 %v869_v25, %v863_v22  ;;  %v292_v29 = vmul.f32 %v869_v25, %v869_v25 }
  0xb6   : > { %259 = vadd.xlane.f32.xlu1 %v258_v26  ;;  %v302_v30 = vadd.f32 %v292_v29, %v291_v28 }
  0xb8   : > { %300 = vadd.xlane.f32.xlu0 %v299_v27 }
  0xbe   : > { %303 = vadd.xlane.f32.xlu1 %v302_v30 }
 0x11b   : > { %v251_v31 = vpop.xlane.xlu0 %250 }
 0x11c   : > { %v261_v32 = vrot.slane %v251_v31, 4 }
 0x11d   : > { %v295_v33 = vpop.xlane.xlu2 %294 }
 0x11e   : > { %v262_v34 = vadd.f32 %v261_v32, %v251_v31  ;;  %v305_v35 = vrot.slane %v295_v33, 4 }
 0x120   : > { %v263_v36 = vrot.slane %v262_v34, 2  ;;  %v306_v37 = vadd.f32 %v305_v35, %v295_v33 }
 0x121   : > { %v257_v38 = vpop.xlane.xlu1 %256 }
 0x122   : > { %v264_v39 = vadd.f32 %v263_v36, %v262_v34  ;;  %v307_v40 = vrot.slane %v306_v37, 2  ;;  %v273_v41 = vrot.slane %v257_v38, 4 }
 0x123   : > { %v254_v42 = vpop.xlane.xlu0 %253 }
 0x124   : > { %v265_v43 = vrot.slane %v264_v39, 1  ;;  %v308_v44 = vadd.f32 %v307_v40, %v306_v37  ;;  %v274_v45 = vadd.f32 %v273_v41, %v257_v38  ;;  %v267_v46 = vrot.slane %v254_v42, 4 }
 0x125   : > { %v298_v47 = vpop.xlane.xlu2 %297 }
 0x126   : > { %v266_v48 = vadd.f32 %v265_v43, %v264_v39  ;;  %v309_v49 = vrot.slane %v308_v44, 1  ;;  %v275_v50 = vrot.slane %v274_v45, 2  ;;  %v268_v51 = vadd.f32 %v267_v46, %v254_v42 }
 0x127   : > { %v311_v52 = vrot.slane %v298_v47, 4 }
 0x128   : > { %v877_v53 = vmul.f32 0.00048828125, %v266_v48  ;;  %v310_v54 = vadd.f32 %v309_v49, %v308_v44  ;;  %v276_v55 = vadd.f32 %v275_v50, %v274_v45  ;;  %v269_v56 = vrot.slane %v268_v51, 2 }
 0x129   : > { %v312_v57 = vadd.f32 %v311_v52, %v298_v47  ;;  %v260_v58 = vpop.xlane.xlu1 %259 }
 0x12a   : > { %v333_v59 = vmul.f32 0.00048828125, %v310_v54  ;;  %v337_v60 = vmul.f32 %v877_v53, %v877_v53  ;;  %v270_v61 = vadd.f32 %v269_v56, %v268_v51  ;;  %v279_v63 = vrot.slane %v260_v58, 4 }
 0x12b   : > { %v313_v62 = vrot.slane %v312_v57, 2  ;;  %v301_v0 = vpop.xlane.xlu0 %300  ;;  %v277_v2 = vrot.slane %v276_v55, 1 }
 0x12c   : > { %v341_v1 = vsub.f32 %v333_v59, %v337_v60  ;;  %v317_v3 = vrot.slane %v301_v0, 4  ;;  %v271_v4 = vrot.slane %v270_v61, 1  ;;  %v280_v6 = vadd.f32 %v279_v63, %v260_v58 }
 0x12d   : > { %v314_v5 = vadd.f32 %v313_v62, %v312_v57  ;;  %v278_v17 = vadd.f32 %v277_v2, %v276_v55  ;;  %v345_v57 = vsub.f32 %v837_v7, %v877_v53  ;;  %v346_v58 = vsub.f32 %v839_v8, %v877_v53 }
 0x12e   : > { %v353_v9 = vadd.f32 1e-05, %v341_v1  ;;  %v318_v10 = vadd.f32 %v317_v3, %v301_v0  ;;  %v272_v11 = vadd.f32 %v271_v4, %v270_v61  ;;  %v281_v16 = vrot.slane %v280_v6, 2 }
 0x12f   : > { %v315_v12 = vrot.slane %v314_v5, 1  ;;  %v885_v30 = vmul.f32 0.00048828125, %v278_v17 }
 0x130   : > { %636 = vrsqrt.f32 %v353_v9  ;;  %v319_v19 = vrot.slane %v318_v10, 2  ;;  %v881_v20 = vmul.f32 0.00048828125, %v272_v11  ;;  %v282_v24 = vadd.f32 %v281_v16, %v280_v6 }
 0x131   : > { %v316_v21 = vadd.f32 %v315_v12, %v314_v5  ;;  %v304_v23 = vpop.xlane.xlu1 %303  ;;  %v339_v41 = vmul.f32 %v885_v30, %v885_v30  ;;  %vm363_vm3 = vweird.f32 %v353_v9 }
 0x132   : > { %v320_v26 = vadd.f32 %v319_v19, %v318_v10  ;;  %v323_v27 = vrot.slane %v304_v23, 4  ;;  %v338_v29 = vmul.f32 %v881_v20, %v881_v20  ;;  %v283_v31 = vrot.slane %v282_v24, 1 }
 0x133   : > { %v334_v28 = vmul.f32 0.00048828125, %v316_v21  ;;  %v348_v10 = vsub.f32 %v857_v18, %v881_v20  ;;  %v350_v18 = vsub.f32 %v849_v14, %v885_v30 }
 0x134   : > { %v321_v32 = vrot.slane %v320_v26, 1  ;;  %v324_v33 = vadd.f32 %v323_v27, %v304_v23  ;;  %v284_v40 = vadd.f32 %v283_v31, %v282_v24 }
 0x135   : > { %v342_v34 = vsub.f32 %v334_v28, %v338_v29 }
 0x136   : > { %v637_v35 = vpop.eup %636  ;;  %v322_v36 = vadd.f32 %v321_v32, %v320_v26  ;;  %v325_v37 = vrot.slane %v324_v33, 2  ;;  %v889_v47 = vmul.f32 0.00048828125, %v284_v40 }
 0x137   : > { %v358_v38 = vmul.f32 %v637_v35, %v353_v9  ;;  %v354_v39 = vadd.f32 1e-05, %v342_v34  ;;  %vm364_vm2 = vweird.f32 %v637_v35  ;;  %v347_v9 = vsub.f32 %v851_v15, %v881_v20 }
 0x138   : > { %v335_v42 = vmul.f32 0.00048828125, %v322_v36  ;;  %v326_v43 = vadd.f32 %v325_v37, %v324_v33  ;;  %v340_v55 = vmul.f32 %v889_v47, %v889_v47  ;;  %vm365_vm4 = vmor %vm363_vm3, %vm364_vm2  ;;  %v349_v15 = vsub.f32 %v847_v13, %v885_v30 }
 0x139   : > { %v359_v44 = vmul.f32 %v637_v35, %v358_v38  ;;  %638 = vrsqrt.f32 %v354_v39  ;;  %vm373_vm6 = vweird.f32 %v354_v39  ;;  %v351_v14 = vsub.f32 %v863_v22, %v889_v47 }
 0x13a   : > { %v343_v45 = vsub.f32 %v335_v42, %v339_v41  ;;  %v327_v48 = vrot.slane %v326_v43, 1  ;;  %v352_v30 = vsub.f32 %v869_v25, %v889_v47 }
 0x13b   : > { %v360_v46 = vmul.f32 0.5, %v359_v44 }
 0x13c   : > { %v355_v49 = vadd.f32 1e-05, %v343_v45  ;;  %v328_v51 = vadd.f32 %v327_v48, %v326_v43 }
 0x13d   : > { %v361_v50 = vsub.f32 1.5, %v360_v46 }
 0x13e   : > { %640 = vrsqrt.f32 %v355_v49  ;;  %v336_v56 = vmul.f32 0.00048828125, %v328_v51  ;;  %vm383_vm9 = vweird.f32 %v355_v49 }
 0x13f   : > { %v639_v52 = vpop.eup %638  ;;  %v362_v54 = vmul.f32 %v637_v35, %v361_v50 }
 0x140   : > { %v368_v59 = vmul.f32 %v639_v52, %v354_v39  ;;  %v344_v61 = vsub.f32 %v336_v56, %v340_v55  ;;  %vm374_vm5 = vweird.f32 %v639_v52 }
 0x141   : > { %v366_v60 = vsel %vm365_vm4, %v637_v35, %v362_v54  ;;  %vm375_vm7 = vmor %vm373_vm6, %vm374_vm5 }
 0x142   : > { %v397_v62 = vmul.f32 %v366_v60, %v345_v57  ;;  %v398_v63 = vmul.f32 %v366_v60, %v346_v58  ;;  %v369_v0 = vmul.f32 %v639_v52, %v368_v59  ;;  %v356_v1 = vadd.f32 1e-05, %v344_v61 }
 0x144   : > { %v641_v2 = vpop.eup %640  ;;  %v405_v3 = vmax.f32 %v397_v62, 0.0  ;;  %v406_v4 = vmax.f32 %v398_v63, 0.0  ;;  %v370_v5 = vmul.f32 0.5, %v369_v0  ;;  %642 = vrsqrt.f32 %v356_v1 }
 0x145   : > { %v378_v6 = vmul.f32 %v641_v2, %v355_v49  ;;  %vm384_vm8 = vweird.f32 %v641_v2  ;;  %vm393_vm12 = vweird.f32 %v356_v1 }
 0x146   : > { %413 = vst [vmem:[%s900_s24] sm:$0xff] %v405_v3  ;;  %v371_v7 = vsub.f32 1.5, %v370_v5  ;;  %vm385_vm10 = vmor %vm383_vm9, %vm384_vm8 }
 0x147   : > { %414 = vst [vmem:[%s900_s24 + $0x8] sm:$0xff] %v406_v4  ;;  %v379_v8 = vmul.f32 %v641_v2, %v378_v6 }
 0x148   : > { %v372_v53 = vmul.f32 %v639_v52, %v371_v7 }
 0x149   : > { %v380_v11 = vmul.f32 0.5, %v379_v8 }
 0x14a   : > { %v376_v12 = vsel %vm375_vm7, %v639_v52, %v372_v53  ;;  %v643_v16 = vpop.eup %642 }
 0x14b   : > { %v399_v17 = vmul.f32 %v376_v12, %v347_v9  ;;  %v400_v19 = vmul.f32 %v376_v12, %v348_v10  ;;  %v381_v21 = vsub.f32 1.5, %v380_v11  ;;  %v388_v23 = vmul.f32 %v643_v16, %v356_v1 }
 0x14c   : > { %vm394_vm11 = vweird.f32 %v643_v16 }
 0x14d   : > { %v407_v24 = vmax.f32 %v399_v17, 0.0  ;;  %v408_v26 = vmax.f32 %v400_v19, 0.0  ;;  %v382_v27 = vmul.f32 %v641_v2, %v381_v21  ;;  %v389_v20 = vmul.f32 %v643_v16, %v388_v23  ;;  %vm395_vm13 = vmor %vm393_vm12, %vm394_vm11 }
 0x14f   : > { %415 = vst [vmem:[%s900_s24 + $0x10] sm:$0xff] %v407_v24  ;;  %v386_v28 = vsel %vm385_vm10, %v641_v2, %v382_v27  ;;  %v390_v32 = vmul.f32 0.5, %v389_v20 }
 0x150   : > { %416 = vst [vmem:[%s900_s24 + $0x18] sm:$0xff] %v408_v26  ;;  %v401_v29 = vmul.f32 %v386_v28, %v349_v15  ;;  %v402_v31 = vmul.f32 %v386_v28, %v350_v18 }
 0x151   : > { %v391_v35 = vsub.f32 1.5, %v390_v32 }
 0x152   : > { %v409_v33 = vmax.f32 %v401_v29, 0.0  ;;  %v410_v34 = vmax.f32 %v402_v31, 0.0 }
 0x153   : > { %v392_v13 = vmul.f32 %v643_v16, %v391_v35 }
 0x154   : > { %417 = vst [vmem:[%s900_s24 + $0x20] sm:$0xff] %v409_v33 }
 0x155   : > { %418 = vst [vmem:[%s900_s24 + $0x28] sm:$0xff] %v410_v34  ;;  %v396_v36 = vsel %vm395_vm13, %v643_v16, %v392_v13 }
 0x156   : > { %v403_v37 = vmul.f32 %v396_v36, %v351_v14  ;;  %v404_v38 = vmul.f32 %v396_v36, %v352_v30 }
 0x158   : > { %v411_v39 = vmax.f32 %v403_v37, 0.0  ;;  %v412_v40 = vmax.f32 %v404_v38, 0.0 }
 0x15a   : > { %419 = vst [vmem:[%s900_s24 + $0x30] sm:$0xff] %v411_v39 }
 0x15b   : > { %420 = vst [vmem:[%s900_s24 + $0x38] sm:$0xff] %v412_v40 }
 0x15c   : > { %671 = shalt.err (!%p668_p7)
}
 0x15d   : > { %s740_s18 = smov 256   ;;  %s741_s24 = smov 16  }
 0x15e   : > { %563 = dma.vmem_to_hbm [thread:$0]  (%p808_p3), %s438_s3, 1024, %s440_s4, %s422_s5, %s740_s18, %s740_s18, %s741_s24  }
 0x15f PF: > { %p569_p9 = scmp.ge.s32.totalorder %s738_s16, 2  ;;  %s454_s28 = sand.u32 1, %s710_s9  }
 0x160   : > { %s455_s12 = scalar_lea.sflag [#allocation3], %s454_s28 }
 0x161   : > { %p566_p10 = pnand %p569_p9, %p817_p8 }
 0x163   : > { %p567_p11 = pneg %p566_p10 }
 0x165   : > { %705 = dma.done.wait (%p567_p11), %s455_s12, 1024  }
 0x166   : > { %707 = vsyncadd (%p567_p11), %s455_s12, 4294966272  ;;  %s15_s16 = sadd.s32 1, %s738_s16   ;;  %s973_s9 = smov %s714_s10 }
 0x167   : > { %p12_p12 = scmp.ge.s32.totalorder %s15_s16, 6   ;;  %s974_s10 = smov %s718_s11 }
 0x168   : > { %s975_s11 = smov %s826_s27  ;;  %s976_s12 = smov %s730_s14 }
 0x169   : > { %s977_s13 = smov %s734_s15  ;;  %s978_s14 = smov %s981_s19 }
 0x16a   : > { %s979_s15 = smov %s985_s20  ;;  %14 = sbr.rel (!%p12_p12) target bundleno = 5 (0x5), region = 66 }
 0x16f   :  { %461 = vsyncpa [#allocation3], 1 }
 0x170   :  { %463 = vsyncpa [#allocation3 + $0x1], 1 }

</bundles_post_ra>
